<compile_context>
chip_gen: v6e
topology: v6e:2x2x1
jax: 0.10.0
libtpu: 0.0.40
codegen_flags: <defaults>
</compile_context>

<pallas_src>
import functools

import jax
import jax.numpy as jnp
from jax import lax
from jax.experimental import pallas as pl
from jax.experimental.pallas import tpu as pltpu

_LN_EPS = 1e-5  # torch.nn.LayerNorm default


def _cdiv(a, b):
    return (a + b - 1) // b


def _round_up(x, m):
    return _cdiv(x, m) * m


def _vmem_limit_bytes():
    # ~75% of physical VMEM: ~96 MiB on v5e/v6e (128 MiB), ~48 MiB on v7x (64 MiB).
    try:
        cap = int(pltpu.get_tpu_info().vmem_capacity_bytes)
    except Exception:
        cap = 64 * 1024 * 1024  # conservative (v7x-sized) fallback
    return (cap * 3) // 4


def _choose_tm(m, q, target=512):
    """Row tile: >=2 even tiles when possible (v7x megacore), padding bounded."""
    mp_min = _round_up(m, q)
    n_tiles = _cdiv(mp_min, target)
    if mp_min >= 2 * q:
        n_tiles = max(2, n_tiles)          # keep both v7x TensorCores busy
    if n_tiles > 1 and (n_tiles % 2):
        n_tiles += 1                       # even tile count -> balanced split
    return _round_up(_cdiv(mp_min, n_tiles), q)


def _gelu_tanh(x):
    # tanh-approximate GELU (EUP tanh; lowers cleanly in Mosaic).
    c = 0.7978845608028654  # sqrt(2/pi)
    return 0.5 * x * (1.0 + jnp.tanh(c * (x + 0.044715 * x * x * x)))


def _ln_mlp_residual_kernel(x_ref, g_ref, bt_ref, w1_ref, b1_ref, w2_ref, b2_ref,
                            o_ref, *, d_valid, d_padded, eps):
    # x_ref : (tm, Dp) original dtype — read ONCE: LayerNorm input, MXU operand
    #         (cast to bf16 in-kernel) and f32 residual all come from this block.
    # g/bt  : (1, Dp) f32 LayerNorm affine.   w1: (Dp, Hp) bf16, b1: (1, Hp) f32.
    # w2    : (Hp, Dp) bf16, b2: (1, Dp) f32. o_ref: (tm, Dp) out dtype.
    x = x_ref[...].astype(jnp.float32)

    inv_d = 1.0 / d_valid
    mean = jnp.sum(x, axis=-1, keepdims=True) * inv_d      # pad lanes are zero
    centered = x - mean
    if d_padded != d_valid:
        # zero-padded lanes must not pollute the variance / normalized input
        valid = lax.broadcasted_iota(jnp.int32, (1, d_padded), 1) < d_valid
        centered = jnp.where(valid, centered, 0.0)
    var = jnp.sum(centered * centered, axis=-1, keepdims=True) * inv_d
    xn = centered * lax.rsqrt(var + eps) * g_ref[...] + bt_ref[...]

    h = jnp.dot(xn.astype(jnp.bfloat16), w1_ref[...],
                preferred_element_type=jnp.float32) + b1_ref[...]
    h = _gelu_tanh(h)
    y = jnp.dot(h.astype(jnp.bfloat16), w2_ref[...],
                preferred_element_type=jnp.float32) + b2_ref[...]
    o_ref[...] = (y + x).astype(o_ref.dtype)


def ff_residual_block(x, gamma, beta, w1, b1, w2, b2, *, eps=_LN_EPS, tm=None,
                      out_dtype=None, min_pallas_dim=128, force_pallas=False):
    """out = x + GELU(LayerNorm(x) @ w1 + b1) @ w2 + b2  (ResidualConnection o PreLayerNorm o MLP)."""
    orig_shape = x.shape
    D = orig_shape[-1]
    H = w1.shape[-1]
    out_dtype = out_dtype or x.dtype
    M = 1
    for s in orig_shape[:-1]:
        M *= s
    x2d = x.reshape(M, D)

    def xla_path():
        mu = jnp.mean(x2d, -1, keepdims=True)
        var = jnp.mean((x2d - mu) ** 2, -1, keepdims=True)
        xn = (x2d - mu) * lax.rsqrt(var + eps) * gamma + beta
        y = _gelu_tanh(xn @ w1 + b1) @ w2 + b2 + x2d
        return y.astype(out_dtype).reshape(orig_shape)

    # Small-D fallback: lane padding to 128 multiplies HBM traffic by 128/D.
    if D < min_pallas_dim and not force_pallas:
        return xla_path()

    Dp = max(128, _round_up(D, 128))
    Hp = max(128, _round_up(H, 128))
    x_isz = jnp.dtype(x.dtype).itemsize
    o_isz = jnp.dtype(out_dtype).itemsize
    q = 8 if (x_isz >= 4 and o_isz >= 4) else 16   # sublane quantum for the row tile
    tm_ = _round_up(tm, q) if tm is not None else _choose_tm(M, q)

    # VMEM budget: resident bf16 weights (double-buffered by default), streamed
    # x/out tiles (double-buffered), small params, in-kernel f32/bf16 temporaries.
    budget = _vmem_limit_bytes()
    weight_bytes = 2 * 2 * (Dp * Hp + Hp * Dp)

    def tile_bytes(t):
        stream = 2 * t * Dp * x_isz + 2 * t * Dp * o_isz
        temps = t * Dp * (4 + 2 + 4) + t * Hp * (4 + 2)
        return stream + temps

    if weight_bytes + tile_bytes(q) > budget:
        # Weights alone don't fit VMEM-resident; leave to XLA (see TODO above).
        return xla_path()
    while tm_ > q and weight_bytes + tile_bytes(tm_) > budget:
        tm_ = max(q, _round_up(tm_ // 2, q))

    Mp = _round_up(M, tm_)

    # Pad x only when actually needed (single extra HBM round-trip at most).
    x_in = x2d if (Mp, Dp) == (M, D) else jnp.pad(x2d, ((0, Mp - M), (0, Dp - D)))
    # Small params: pre-cast / pad in the wrapper (cheap), weights to bf16 for MXU.
    gamma_p = jnp.pad(gamma.astype(jnp.float32), (0, Dp - D)).reshape(1, Dp)
    beta_p = jnp.pad(beta.astype(jnp.float32), (0, Dp - D)).reshape(1, Dp)
    w1_p = jnp.pad(w1.astype(jnp.bfloat16), ((0, Dp - D), (0, Hp - H)))
    b1_p = jnp.pad(b1.astype(jnp.float32), (0, Hp - H)).reshape(1, Hp)
    w2_p = jnp.pad(w2.astype(jnp.bfloat16), ((0, Hp - H), (0, Dp - D)))
    b2_p = jnp.pad(b2.astype(jnp.float32), (0, Dp - D)).reshape(1, Dp)

    grid_m = Mp // tm_
    flops = 4 * Mp * Dp * Hp                      # two matmuls
    bytes_accessed = (Mp * Dp * (x_isz + o_isz)   # x read once, out written once
                      + 2 * Dp * Hp * 2           # resident bf16 weights, read once
                      + (3 * Dp + Hp) * 4)        # gamma/beta/b2 + b1
    cost = pl.CostEstimate(flops=flops, transcendentals=Mp * Hp,
                           bytes_accessed=int(bytes_accessed))

    kernel = functools.partial(_ln_mlp_residual_kernel,
                               d_valid=D, d_padded=Dp, eps=eps)

    out_pad = pl.pallas_call(
        kernel,
        out_shape=jax.ShapeDtypeStruct((Mp, Dp), out_dtype),
        grid_spec=pltpu.PrefetchScalarGridSpec(
            num_scalar_prefetch=0,
            grid=(grid_m,),
            in_specs=[
                pl.BlockSpec((tm_, Dp), lambda i: (i, 0)),   # x: single read
                pl.BlockSpec((1, Dp), lambda i: (0, 0)),     # gamma   (resident)
                pl.BlockSpec((1, Dp), lambda i: (0, 0)),     # beta    (resident)
                pl.BlockSpec((Dp, Hp), lambda i: (0, 0)),    # W1 bf16 (resident)
                pl.BlockSpec((1, Hp), lambda i: (0, 0)),     # b1      (resident)
                pl.BlockSpec((Hp, Dp), lambda i: (0, 0)),    # W2 bf16 (resident)
                pl.BlockSpec((1, Dp), lambda i: (0, 0)),     # b2      (resident)
            ],
            out_specs=pl.BlockSpec((tm_, Dp), lambda i: (i, 0)),
        ),
        compiler_params=pltpu.CompilerParams(
            dimension_semantics=("parallel",),
            vmem_limit_bytes=budget,
        ),
        cost_estimate=cost,
    )(x_in, gamma_p, beta_p, w1_p, b1_p, w2_p, b2_p)

    out = out_pad if (Mp, Dp) == (M, D) else out_pad[:M, :D]
    return out.reshape(orig_shape)


def _reference(x, gamma, beta, w1, b1, w2, b2, eps=_LN_EPS):
    mu = jnp.mean(x, -1, keepdims=True)
    var = jnp.mean((x - mu) ** 2, -1, keepdims=True)
    xn = (x - mu) / jnp.sqrt(var + eps) * gamma + beta
    return _gelu_tanh(xn @ w1 + b1) @ w2 + b2 + x


if __name__ == "__main__":
    # Graph-node features consistent with UserTransformerEncoder:
    # 16 'product' nodes, in_channels (dim) = 32, dim_mlp = 64.
    ks = jax.random.split(jax.random.PRNGKey(0), 7)
    n_nodes, dim, dim_mlp = 16, 32, 64
    x = jax.random.normal(ks[0], (n_nodes, dim), dtype=jnp.float32)
    gamma = 1.0 + 0.1 * jax.random.normal(ks[1], (dim,), dtype=jnp.float32)
    beta = 0.1 * jax.random.normal(ks[2], (dim,), dtype=jnp.float32)
    w1 = 0.05 * jax.random.normal(ks[3], (dim, dim_mlp), dtype=jnp.float32)
    b1 = 0.01 * jax.random.normal(ks[4], (dim_mlp,), dtype=jnp.float32)
    w2 = 0.05 * jax.random.normal(ks[5], (dim_mlp, dim), dtype=jnp.float32)
    b2 = 0.01 * jax.random.normal(ks[6], (dim,), dtype=jnp.float32)

    # force_pallas: D=32 < 128 would otherwise take the small-D XLA fallback;
    # force the Pallas path so the kernel itself is exercised at the demo shape.
    out = jax.block_until_ready(
        ff_residual_block(x, gamma, beta, w1, b1, w2, b2, force_pallas=True))
    ref = _reference(x, gamma, beta, w1, b1, w2, b2)
    assert out.shape == x.shape
    assert jnp.allclose(out, ref, atol=2e-2, rtol=2e-2), float(
        jnp.max(jnp.abs(out - ref)))

    # Lane-dense shape: natural Pallas path, no padding, 2 parallel row tiles.
    k2 = jax.random.split(jax.random.PRNGKey(1), 7)
    n2, d2, h2 = 1024, 256, 512
    x2 = jax.random.normal(k2[0], (n2, d2), dtype=jnp.float32)
    g2 = 1.0 + 0.1 * jax.random.normal(k2[1], (d2,), dtype=jnp.float32)
    bt2 = 0.1 * jax.random.normal(k2[2], (d2,), dtype=jnp.float32)
    w1b = 0.02 * jax.random.normal(k2[3], (d2, h2), dtype=jnp.float32)
    b1b = 0.01 * jax.random.normal(k2[4], (h2,), dtype=jnp.float32)
    w2b = 0.02 * jax.random.normal(k2[5], (h2, d2), dtype=jnp.float32)
    b2b = 0.01 * jax.random.normal(k2[6], (d2,), dtype=jnp.float32)
    out2 = jax.block_until_ready(
        ff_residual_block(x2, g2, bt2, w1b, b1b, w2b, b2b))
    ref2 = _reference(x2, g2, bt2, w1b, b1b, w2b, b2b)
    assert out2.shape == x2.shape
    assert jnp.allclose(out2, ref2, atol=2e-2, rtol=2e-2), float(
        jnp.max(jnp.abs(out2 - ref2)))

    print("KERNEL_OK")
</pallas_src>

<mosaic_0001>
module attributes {stable_mosaic.version = 11 : i64} {
  func.func @_ln_mlp_residual_kernel(%arg0: i32, %arg1: memref<8x128xf32, #tpu.memory_space<vmem>>, %arg2: memref<1x128xf32, #tpu.memory_space<vmem>>, %arg3: memref<1x128xf32, #tpu.memory_space<vmem>>, %arg4: memref<128x128xbf16, #tpu.memory_space<vmem>>, %arg5: memref<1x128xf32, #tpu.memory_space<vmem>>, %arg6: memref<128x128xbf16, #tpu.memory_space<vmem>>, %arg7: memref<1x128xf32, #tpu.memory_space<vmem>>, %arg8: memref<8x128xf32, #tpu.memory_space<vmem>>) attributes {dimension_semantics = [#tpu.dimension_semantics<parallel>], iteration_bounds = array<i64: 2>, scalar_prefetch = 0 : i64, scratch_operands = 0 : i64, tpu.core_type = #tpu.core_type<tc>, window_params = [{transform_indices = @transform_0, window_bounds = array<i64: 8, 128>}, {pipeline_mode = #tpu.pipeline_mode<synchronous>, transform_indices = @transform_1, window_bounds = array<i64: 1, 128>}, {pipeline_mode = #tpu.pipeline_mode<synchronous>, transform_indices = @transform_2, window_bounds = array<i64: 1, 128>}, {pipeline_mode = #tpu.pipeline_mode<synchronous>, transform_indices = @transform_3, window_bounds = array<i64: 128, 128>}, {pipeline_mode = #tpu.pipeline_mode<synchronous>, transform_indices = @transform_4, window_bounds = array<i64: 1, 128>}, {pipeline_mode = #tpu.pipeline_mode<synchronous>, transform_indices = @transform_5, window_bounds = array<i64: 128, 128>}, {pipeline_mode = #tpu.pipeline_mode<synchronous>, transform_indices = @transform_6, window_bounds = array<i64: 1, 128>}, {transform_indices = @transform_7, window_bounds = array<i64: 8, 128>}]} {
    %c0 = arith.constant 0 : index
    %c0_0 = arith.constant 0 : index
    %0 = vector.load %arg1[%c0, %c0_0] : memref<8x128xf32, #tpu.memory_space<vmem>>, vector<8x128xf32>
    %cst = arith.constant dense<0.000000e+00> : vector<8xf32>
    %1 = vector.multi_reduction <add>, %0, %cst [1] : vector<8x128xf32> to vector<8xf32>
    %2 = vector.shape_cast %1 : vector<8xf32> to vector<8x1xf32>
    %cst_1 = arith.constant 3.125000e-02 : f32
    %3 = vector.broadcast %cst_1 : f32 to vector<8x1xf32>
    %4 = arith.mulf %2, %3 : vector<8x1xf32>
    %5 = vector.broadcast %4 : vector<8x1xf32> to vector<8x128xf32>
    %6 = arith.subf %0, %5 : vector<8x128xf32>
    %7 = tpu.iota {dimensions = array<i32: 1>} : vector<1x128xi32>
    %c32_i32 = arith.constant 32 : i32
    %8 = vector.broadcast %c32_i32 : i32 to vector<1x128xi32>
    %9 = arith.cmpi slt, %7, %8 : vector<1x128xi32>
    %cst_2 = arith.constant 0.000000e+00 : f32
    %10 = vector.shape_cast %9 : vector<1x128xi1> to vector<1x128xi1>
    %11 = vector.broadcast %10 : vector<1x128xi1> to vector<8x128xi1>
    %12 = vector.broadcast %cst_2 : f32 to vector<8x128xf32>
    %13 = arith.select %11, %6, %12 : vector<8x128xi1>, vector<8x128xf32>
    %14 = arith.mulf %13, %13 : vector<8x128xf32>
    %cst_3 = arith.constant dense<0.000000e+00> : vector<8xf32>
    %15 = vector.multi_reduction <add>, %14, %cst_3 [1] : vector<8x128xf32> to vector<8xf32>
    %16 = vector.shape_cast %15 : vector<8xf32> to vector<8x1xf32>
    %cst_4 = arith.constant 3.125000e-02 : f32
    %17 = vector.broadcast %cst_4 : f32 to vector<8x1xf32>
    %18 = arith.mulf %16, %17 : vector<8x1xf32>
    %cst_5 = arith.constant 9.99999974E-6 : f32
    %19 = vector.broadcast %cst_5 : f32 to vector<8x1xf32>
    %20 = arith.addf %18, %19 : vector<8x1xf32>
    %21 = math.rsqrt %20 : vector<8x1xf32>
    %22 = vector.broadcast %21 : vector<8x1xf32> to vector<8x128xf32>
    %23 = arith.mulf %13, %22 : vector<8x128xf32>
    %c0_6 = arith.constant 0 : index
    %c0_7 = arith.constant 0 : index
    %24 = vector.load %arg2[%c0_6, %c0_7] : memref<1x128xf32, #tpu.memory_space<vmem>>, vector<1x128xf32>
    %25 = vector.broadcast %24 : vector<1x128xf32> to vector<8x128xf32>
    %26 = arith.mulf %23, %25 : vector<8x128xf32>
    %c0_8 = arith.constant 0 : index
    %c0_9 = arith.constant 0 : index
    %27 = vector.load %arg3[%c0_8, %c0_9] : memref<1x128xf32, #tpu.memory_space<vmem>>, vector<1x128xf32>
    %28 = vector.broadcast %27 : vector<1x128xf32> to vector<8x128xf32>
    %29 = arith.addf %26, %28 : vector<8x128xf32>
    %30 = arith.truncf %29 : vector<8x128xf32> to vector<8x128xbf16>
    %c0_10 = arith.constant 0 : index
    %c0_11 = arith.constant 0 : index
    %31 = vector.load %arg4[%c0_10, %c0_11] : memref<128x128xbf16, #tpu.memory_space<vmem>>, vector<128x128xbf16>
    %cst_12 = arith.constant dense<0.000000e+00> : vector<8x128xf32>
    %32 = tpu.matmul %30, %31, %cst_12 {dimension_numbers = #tpu.dot_dimension_numbers<[1], [0], [0], [1], [0, 0, 1, 1], [], []>} : vector<8x128xbf16>, vector<128x128xbf16>, vector<8x128xf32> -> vector<8x128xf32>
    %c0_13 = arith.constant 0 : index
    %c0_14 = arith.constant 0 : index
    %33 = vector.load %arg5[%c0_13, %c0_14] : memref<1x128xf32, #tpu.memory_space<vmem>>, vector<1x128xf32>
    %34 = vector.broadcast %33 : vector<1x128xf32> to vector<8x128xf32>
    %35 = arith.addf %32, %34 : vector<8x128xf32>
    %cst_15 = arith.constant 5.000000e-01 : f32
    %36 = vector.broadcast %cst_15 : f32 to vector<8x128xf32>
    %37 = arith.mulf %36, %35 : vector<8x128xf32>
    %cst_16 = arith.constant 4.471500e-02 : f32
    %38 = vector.broadcast %cst_16 : f32 to vector<8x128xf32>
    %39 = arith.mulf %38, %35 : vector<8x128xf32>
    %40 = arith.mulf %39, %35 : vector<8x128xf32>
    %41 = arith.mulf %40, %35 : vector<8x128xf32>
    %42 = arith.addf %35, %41 : vector<8x128xf32>
    %cst_17 = arith.constant 0.797884583 : f32
    %43 = vector.broadcast %cst_17 : f32 to vector<8x128xf32>
    %44 = arith.mulf %43, %42 : vector<8x128xf32>
    %45 = math.tanh %44 : vector<8x128xf32>
    %cst_18 = arith.constant 1.000000e+00 : f32
    %46 = vector.broadcast %cst_18 : f32 to vector<8x128xf32>
    %47 = arith.addf %46, %45 : vector<8x128xf32>
    %48 = arith.mulf %37, %47 : vector<8x128xf32>
    %49 = arith.truncf %48 : vector<8x128xf32> to vector<8x128xbf16>
    %c0_19 = arith.constant 0 : index
    %c0_20 = arith.constant 0 : index
    %50 = vector.load %arg6[%c0_19, %c0_20] : memref<128x128xbf16, #tpu.memory_space<vmem>>, vector<128x128xbf16>
    %cst_21 = arith.constant dense<0.000000e+00> : vector<8x128xf32>
    %51 = tpu.matmul %49, %50, %cst_21 {dimension_numbers = #tpu.dot_dimension_numbers<[1], [0], [0], [1], [0, 0, 1, 1], [], []>} : vector<8x128xbf16>, vector<128x128xbf16>, vector<8x128xf32> -> vector<8x128xf32>
    %c0_22 = arith.constant 0 : index
    %c0_23 = arith.constant 0 : index
    %52 = vector.load %arg7[%c0_22, %c0_23] : memref<1x128xf32, #tpu.memory_space<vmem>>, vector<1x128xf32>
    %53 = vector.broadcast %52 : vector<1x128xf32> to vector<8x128xf32>
    %54 = arith.addf %51, %53 : vector<8x128xf32>
    %55 = arith.addf %54, %0 : vector<8x128xf32>
    %c0_24 = arith.constant 0 : index
    %c0_25 = arith.constant 0 : index
    %56 = vector.load %arg8[%c0_24, %c0_25] : memref<8x128xf32, #tpu.memory_space<vmem>>, vector<8x128xf32>
    tpu.vector_store %arg8[%c0_24, %c0_25], %55 {strides = array<i32>} : memref<8x128xf32, #tpu.memory_space<vmem>>, vector<8x128xf32>,
    return
  }
  func.func @transform_0(%arg0: i32) -> (i32, i32) {
    %c0_i32 = arith.constant 0 : i32
    %c0_i32_0 = arith.constant 0 : i32
    return %arg0, %c0_i32 : i32, i32
  }
  func.func @transform_1(%arg0: i32) -> (i32, i32) {
    %c0_i32 = arith.constant 0 : i32
    %c0_i32_0 = arith.constant 0 : i32
    %c0_i32_1 = arith.constant 0 : i32
    return %c0_i32, %c0_i32_0 : i32, i32
  }
  func.func @transform_2(%arg0: i32) -> (i32, i32) {
    %c0_i32 = arith.constant 0 : i32
    %c0_i32_0 = arith.constant 0 : i32
    %c0_i32_1 = arith.constant 0 : i32
    return %c0_i32, %c0_i32_0 : i32, i32
  }
  func.func @transform_3(%arg0: i32) -> (i32, i32) {
    %c0_i32 = arith.constant 0 : i32
    %c0_i32_0 = arith.constant 0 : i32
    %c0_i32_1 = arith.constant 0 : i32
    return %c0_i32, %c0_i32_0 : i32, i32
  }
  func.func @transform_4(%arg0: i32) -> (i32, i32) {
    %c0_i32 = arith.constant 0 : i32
    %c0_i32_0 = arith.constant 0 : i32
    %c0_i32_1 = arith.constant 0 : i32
    return %c0_i32, %c0_i32_0 : i32, i32
  }
  func.func @transform_5(%arg0: i32) -> (i32, i32) {
    %c0_i32 = arith.constant 0 : i32
    %c0_i32_0 = arith.constant 0 : i32
    %c0_i32_1 = arith.constant 0 : i32
    return %c0_i32, %c0_i32_0 : i32, i32
  }
  func.func @transform_6(%arg0: i32) -> (i32, i32) {
    %c0_i32 = arith.constant 0 : i32
    %c0_i32_0 = arith.constant 0 : i32
    %c0_i32_1 = arith.constant 0 : i32
    return %c0_i32, %c0_i32_0 : i32, i32
  }
  func.func @transform_7(%arg0: i32) -> (i32, i32) {
    %c0_i32 = arith.constant 0 : i32
    %c0_i32_0 = arith.constant 0 : i32
    return %arg0, %c0_i32 : i32, i32
  }
}

</mosaic_0001>

<bundles_post_ra>
// kernel: tpu_custom_call.1
= control target key start
LH: loop header
LB: loop body
LE: loop exit
PB: predicated region body
PF: predicated region fallthrough
CT: control target
= control target key end

     0   :  { %s1295_s0 = inlined_call_operand.hbm [shape: f32[16,128], index: 0, kind: input, shape index: {}]   ;;  %s1296_s1 = inlined_call_operand.vmem [shape: f32[1,128], index: 1, kind: input, shape index: {}]   ;;  %s1297_s2 = inlined_call_operand.vmem [shape: f32[1,128], index: 2, kind: input, shape index: {}]   ;;  %s1298_s3 = inlined_call_operand.hbm [shape: bf16[128,128], index: 3, kind: input, shape index: {}]   ;;  %s1299_s4 = inlined_call_operand.vmem [shape: f32[1,128], index: 4, kind: input, shape index: {}]   ;;  %s1300_s5 = inlined_call_operand.hbm [shape: bf16[128,128], index: 5, kind: input, shape index: {}]   ;;  %s1301_s6 = inlined_call_operand.vmem [shape: f32[1,128], index: 6, kind: input, shape index: {}]   ;;  %s1302_s7 = inlined_call_operand.hbm [shape: f32[16,128], index: 7, kind: output, shape index: {}]  }
   0x1   :  { %1307 = sst [smem:[#allocation12_spill]] %s1298_s3 }
   0x2   :  { %1308 = sst [smem:[#allocation13_spill]] %s1300_s5 }
   0x3   :  { %12 = vsyncpa [#allocation3], 0 }
   0x4   :  { %14 = vsyncpa [#allocation3 + $0x1], 0 }
   0x5   :  { %15 = vsyncpa [#allocation6], 0 }
   0x6   :  { %16 = vsyncpa [#allocation4], 0 }
   0x7   :  { %18 = vsyncpa [#allocation4 + $0x1], 0  ;;  %s1079_s24 = smov 0   ;;  %s1081_s25 = smov 0  }
   0x8   :  { %s1083_s26 = smov 0   ;;  %s1085_s27 = smov 0  }
   0x9 LB: > { %s1100_s28 = sadd.s32 4294967295, %s1029_s27   ;;  %s696_s29 = sadd.s32 4294967294, %s1029_s27   ;;  %s1029_s27 = sphi %s1085_s27, %s1328_s27   ;;  %s1025_s26 = sphi %s1083_s26, %s1327_s26   ;;  %s1021_s25 = sphi %s1081_s25, %s1326_s25   ;;  %s1017_s24 = sphi %s1079_s24, %s1325_s24  }
   0xa   : > { %p44_p0 = scmp.ne.s32.totalorder %s1021_s25, %s1017_s24  ;;  %p1303_p1 = scmp.eq.s32.totalorder %s1100_s28, 0 }
   0xb   : > { %p200_p3 = scmp.eq.s32.totalorder %s696_s29, 1  ;;  %p697_p5 = scmp.ge.s32.totalorder %s1029_s27, 1 }
   0xc   : > { %p1109_p4 = por %p1303_p1, %p44_p0  ;;  %p207_p7 = scmp.lt.s32.totalorder %s1029_s27, 3 }
   0xd   : > { %p1114_p6 = por %p200_p3, %p44_p0  ;;  %s1031_s10 = smov [#allocation5]  }
   0xe   : > { %s1309_s30 = scalar_select %p1109_p4, 1, 0 }
   0xf   : > { %s1310_s8 = scalar_select %p1114_p6, 1, 0 }
  0x10   : > { %p1119_p8 = pnand %p697_p5, %p207_p7  ;;  %s225_s11 = sshll.u32 %s1031_s10, 4  ;;  %s226_s11 = int_to_ptr.vmem [resolvable:$true] %s225_s11 }
  0x11   : > { %s1032_s13 = smov [#allocation7]   ;;  %s892_s15 = scalar_lea.vmem %s226_s11, 1024 }
  0x12   : > { %s1311_s9 = scalar_select %p1119_p8, 1, 0 }
  0x13   : > { %p802_p9 = pneg %p1119_p8  ;;  %s241_s14 = sshll.u32 %s1032_s13, 4  ;;  %s242_s14 = int_to_ptr.vmem [resolvable:$true] %s241_s14 }
  0x14   : > { %p893_p13 = scmp.ne.s32.totalorder %s226_s11, %s892_s15  ;;  %p900_p5 = scmp.lt.s32.totalorder %s226_s11, %s226_s11 }
  0x15   : > { %p1128_p11 = pnand %p802_p9, %p1303_p1  ;;  %p901_p7 = scmp.lt.s32.totalorder %s892_s15, %s892_s15 }
  0x17   : > { %p883_p12 = pneg %p1128_p11  ;;  %p902_p10 = por %p901_p7, %p900_p5 }
  0x19   : > { %p895_p0 = pnand %p893_p13, %p883_p12 }
  0x1b   : > { %p896_p3 = pneg %p895_p0 }
  0x1d   : > { %p903_p9 = pnand %p902_p10, %p896_p3 }
  0x1f   : > { %906 = shalt.err (!%p903_p9)
}
  0x20   : > { %s1033_s16 = smov 64   ;;  %s1034_s17 = smov 4  }
  0x21   : > { %s1313_s3 = sld [smem:[#allocation12_spill]]  ;;  %s918_s20 = scalar_lea.vmem %s242_s14, 1024 }
  0x22   : > { %p919_p1 = scmp.ne.s32.totalorder %s242_s14, %s918_s20  ;;  %p926_p2 = scmp.lt.s32.totalorder %s242_s14, %s242_s14 }
  0x23   : > { %p927_p6 = scmp.lt.s32.totalorder %s918_s20, %s918_s20 }
  0x24   : > { %p921_p13 = pnand %p919_p1, %p883_p12 }
  0x25   : > { %p928_p5 = por %p927_p6, %p926_p2 }
  0x26   : > { %p922_p0 = pneg %p921_p13 }
  0x27   : > { %805 = dma.hbm_to_vmem [thread:$0]  (!%p1128_p11), %s1313_s3, 1024, %s226_s11, [#allocation6], %s1033_s16, %s1033_s16, %s1034_s17  }
  0x28   : > { %p929_p10 = pnand %p928_p5, %p922_p0 }
  0x2a   : > { %932 = shalt.err (!%p929_p10)
}
  0x2b   : > { %s1314_s5 = sld [smem:[#allocation13_spill]]  ;;  %s1151_s23 = sadd.s32 1, %s1029_s27  }
  0x2c   : > { %s31_s29 = sadd.s32 1, %s1025_s26  ;;  %s28_s10 = ssub.s32 %s1029_s27, %s1151_s23 }
  0x2d   : > { %p38_p1 = scmp.ne.s32.totalorder %s1025_s26, %s1021_s25  ;;  %p29_p2 = scmp.eq.s32.totalorder %s28_s10, 0 }
  0x2e   : > { %p39_p6 = scmp.eq.s32.totalorder %s1029_s27, 0  ;;  %p1315_p12 = scmp.eq.s32.totalorder %s1100_s28, 1 }
  0x2f   : > { %p819_p7 = scmp.lt.s32.totalorder %s1029_s27, 2  ;;  %s258_s13 = sand.u32 1, %s1025_s26  }
  0x30   : > { %p1161_p3 = por %p1315_p12, %p38_p1  ;;  %p40_p9 = por %p39_p6, %p38_p1 }
  0x31   : > { %808 = dma.hbm_to_vmem [thread:$0]  (!%p1128_p11), %s1314_s5, 1024, %s242_s14, [#allocation6], %s1033_s16, %s1033_s16, %s1034_s17  }
  0x32   : > { %s1316_s11 = scalar_select %p1161_p3, 1, 0 }
  0x33   : > { %s1167_s12 = scalar_select %p29_p2, %s1025_s26, %s31_s29  }
  0x34   : > { %s701_s15 = sshll.u32 %s258_s13, 3  ;;  %s702_s14 = sshll.u32 %s1029_s27, 7 }
  0x35   : > { %s1174_s18 = scalar_lea.hbm %s1295_s0, %s702_s14  ;;  %s262_s19 = scalar_lea.vmem [#allocation2], %s701_s15 }
  0x36   : > { %s269_s20 = sshll.u32 %s262_s19, 4  ;;  %p1176_p11 = pnand %p819_p7, %p40_p9  ;;  %s270_s20 = int_to_ptr.vmem [resolvable:$true] %s269_s20 }
  0x37   : > { %s259_s22 = scalar_lea.sflag [#allocation3], %s258_s13  ;;  %s933_s29 = scalar_lea.hbm %s1174_s18, 128 }
  0x38   : > { %p934_p13 = scmp.ne.s32.totalorder %s1174_s18, %s933_s29  ;;  %p935_p0 = pneg %p1176_p11 }
  0x39   : > { %s938_s16 = scalar_lea.hbm %s1295_s0, 256  ;;  %p939_p1 = scmp.lt.s32.totalorder %s1174_s18, %s1295_s0 }
  0x3a   : > { %p936_p5 = pnand %p935_p0, %p934_p13  ;;  %p940_p2 = scmp.lt.s32.totalorder %s938_s16, %s933_s29 }
  0x3c   : > { %p937_p10 = pneg %p936_p5  ;;  %p941_p6 = por %p940_p2, %p939_p1 }
  0x3e   : > { %p942_p12 = pnand %p941_p6, %p937_p10 }
  0x40   : > { %945 = shalt.err (!%p942_p12)
}
  0x41   : > { %s946_s19 = scalar_lea.vmem %s270_s20, 128  ;;  %s1035_s13 = smov [#allocation2]  }
  0x42   : > { %p947_p7 = scmp.ne.s32.totalorder %s270_s20, %s946_s19  ;;  %s951_s3 = sshll.u32 %s1035_s13, 4  ;;  %s952_s3 = int_to_ptr.vmem [resolvable:$false] %s951_s3 }
  0x43   : > { %s953_s5 = scalar_lea.vmem %s952_s3, 256  ;;  %p954_p13 = scmp.lt.s32.totalorder %s270_s20, %s952_s3 }
  0x44   : > { %p949_p9 = pnand %p947_p7, %p935_p0  ;;  %p955_p5 = scmp.lt.s32.totalorder %s953_s5, %s946_s19 }
  0x46   : > { %p950_p3 = pneg %p949_p9  ;;  %p956_p4 = por %p955_p5, %p954_p13 }
  0x48   : > { %p957_p8 = pnand %p956_p4, %p950_p3 }
  0x4a   : > { %960 = shalt.err (!%p957_p8)
}
  0x4b   : > { %812 = dma.hbm_to_vmem [thread:$0]  (!%p1176_p11), %s1174_s18, 128, %s270_s20, %s259_s22  }
  0x4c   : > { %p1318_p10 = scmp.ne.s32.totalorder %s1311_s9, 0 }
  0x4d   : > { %s1197_s29 = sand.u32 (!%p1318_p10), 1, %s1021_s25   ;;  %p1319_p4 = scmp.ne.s32.totalorder (!%p1318_p10), %s1309_s30, 0 }
  0x4e   : > { %278 = sbr.rel (%p1318_p10) target bundleno = 833 (0x341), region = 48  ;;  %s704_s10 = sshll.u32 (!%p1318_p10), %s1197_s29, 3 }
  0x4f   : > { %s281_s3 = scalar_lea.sflag (!%p1318_p10), [#allocation3], %s1197_s29  ;;  %s284_s5 = scalar_lea.vmem (!%p1318_p10), [#allocation2], %s704_s10 }
  0x53   : > { %1004 = dma.done.wait (%p1319_p4), %s281_s3, 128  }
  0x54   : > { %1006 = vsyncadd (%p1319_p4), %s281_s3, 4294967168  ;;  %p1320_p8 = scmp.eq.s32.totalorder %s1100_s28, 0 }
  0x56   : > { %1008 = dma.done.wait (%p1320_p8), [#allocation6], 2048   ;;  %p1321_p3 = pmov %p1320_p8 }
  0x57   : > { %v1211_v0 = vld [vmem:[%s284_s5] sm:$0xff]  ;;  %v1036_v2 = vmov 0.0   ;;  %v329_v4 = vlaneseq  ;;  %v863_v11 = vld [vmem:[#allocation5 + $0x28] sm:$0xff]   ;;  %v864_v12 = vld [vmem:[#allocation5 + $0x20] sm:$0xff]   ;;  %vm1037_vm1 = vmmov 0   ;;  %s729_s17 = sshll.u32 %s1100_s28, 7 }
  0x58   : > { %1010 = vsyncadd (%p1321_p3), [#allocation6], 4294965248  ;;  %325 = vadd.xlane.f32.xlu0 %v1211_v0  ;;  %v861_v1 = vld [vmem:[#allocation5 + $0x38] sm:$0xff]   ;;  %750 = vmatprep.subr.bf16.mxu0 %v1036_v2  ;;  %v862_v3 = vld [vmem:[#allocation5 + $0x30] sm:$0xff]   ;;  %s322_s15 = scalar_lea.vmem [#allocation8], %s704_s10  ;;  %s1252_s5 = scalar_lea.hbm %s1302_s7, %s729_s17 }
  0x59   : > { %770 = vmatprep.subr.bf16.mxu1 %v1036_v2  ;;  %751 = vmatpush3.bf16.msra.mxu0 %v861_v1  ;;  %v330_v5 = vand.u32 127, %v329_v4  ;;  %v865_v13 = vld [vmem:[#allocation5 + $0x18] sm:$0xff]   ;;  %v866_v14 = vld [vmem:[#allocation5 + $0x10] sm:$0xff]   ;;  %v867_v15 = vld [vmem:[#allocation5 + $0x8] sm:$0xff]   ;;  %s607_s19 = sshll.u32 %s322_s15, 4  ;;  %s594_s28 = scalar_lea.sflag [#allocation4], %s1197_s29  ;;  %s1254_s19 = int_to_ptr.vmem [resolvable:$true] %s607_s19 }
  0x5a   : > { %752 = vmatprep.subr.bf16.mxu0 %v1036_v2  ;;  %766 = vmatprep.mubr.msk.bf16.mxu0 %vm1037_vm1, %v1036_v2  ;;  %v868_v16 = vld [vmem:[#allocation5] sm:$0xff]   ;;  %v708_v21 = vld [vmem:[%s1296_s1] ss:$0 sm:$0xff]  ;;  %v869_v27 = vld [vmem:[#allocation7 + $0x38] sm:$0xff]   ;;  %s961_s10 = scalar_lea.vmem %s1254_s19, 128  ;;  %p1322_p0 = scmp.ne.s32.totalorder %s1316_s11, 0 }
  0x5b   : > { %vm331_vm0 = vcmp.lt.s32.totalorder %v330_v5, 32  ;;  %786 = vmatprep.mubr.msk.bf16.mxu1 %vm1037_vm1, %v1036_v2  ;;  %v709_v23 = vld [vmem:[%s1297_s2] ss:$0 sm:$0xff]  ;;  %771 = vmatpush3.bf16.msra.mxu1 %v869_v27  ;;  %v871_v29 = vld [vmem:[#allocation7 + $0x28] sm:$0xff]   ;;  %v872_v30 = vld [vmem:[#allocation7 + $0x20] sm:$0xff]   ;;  %p962_p11 = scmp.ne.s32.totalorder %s1254_s19, %s961_s10  ;;  %s1038_s30 = smov [#allocation8]  }
  0x5c   : > { %772 = vmatprep.subr.bf16.mxu1 %v1036_v2  ;;  %v870_v28 = vld [vmem:[#allocation7 + $0x30] sm:$0xff]   ;;  %v873_v31 = vld [vmem:[#allocation7 + $0x18] sm:$0xff]   ;;  %v875_v33 = vld [vmem:[#allocation7 + $0x8] sm:$0xff]   ;;  %s965_s9 = sshll.u32 %s1038_s30, 4  ;;  %s966_s9 = int_to_ptr.vmem [resolvable:$false] %s965_s9 }
  0x5d   : > { %753 = vmatpush3.bf16.msra.mxu0 %v862_v3  ;;  %v874_v32 = vld [vmem:[#allocation7 + $0x10] sm:$0xff]   ;;  %v876_v34 = vld [vmem:[#allocation7] sm:$0xff]   ;;  %p963_p1 = pnand %p962_p11, %p1322_p0  ;;  %s967_s18 = scalar_lea.vmem %s966_s9, 256 }
  0x5e   : > { %754 = vmatprep.subr.bf16.mxu0 %v1036_v2  ;;  %v710_v35 = vld [vmem:[%s1299_s4] ss:$0 sm:$0xff]  ;;  %p968_p6 = scmp.lt.s32.totalorder %s1254_s19, %s966_s9  ;;  %p969_p12 = scmp.lt.s32.totalorder %s967_s18, %s961_s10 }
  0x5f   : > { %773 = vmatpush3.bf16.msra.mxu1 %v870_v28  ;;  %v719_v51 = vld [vmem:[%s1301_s6] ss:$0 sm:$0xff]  ;;  %p964_p2 = pneg %p963_p1 }
  0x60   : > { %774 = vmatprep.subr.bf16.mxu1 %v1036_v2  ;;  %p970_p7 = por %p969_p12, %p968_p6 }
  0x61   : > { %755 = vmatpush3.bf16.msra.mxu0 %v863_v11 }
  0x62   : > { %756 = vmatprep.subr.bf16.mxu0 %v1036_v2  ;;  %p971_p9 = pnand %p970_p7, %p964_p2 }
  0x63   : > { %775 = vmatpush3.bf16.msra.mxu1 %v871_v29 }
  0x64   : > { %776 = vmatprep.subr.bf16.mxu1 %v1036_v2 }
  0x65   : > { %757 = vmatpush3.bf16.msra.mxu0 %v864_v12 }
  0x66   : > { %758 = vmatprep.subr.bf16.mxu0 %v1036_v2 }
  0x67   : > { %777 = vmatpush3.bf16.msra.mxu1 %v872_v30 }
  0x68   : > { %778 = vmatprep.subr.bf16.mxu1 %v1036_v2 }
  0x69   : > { %759 = vmatpush3.bf16.msra.mxu0 %v865_v13 }
  0x6a   : > { %760 = vmatprep.subr.bf16.mxu0 %v1036_v2 }
  0x6b   : > { %779 = vmatpush3.bf16.msra.mxu1 %v873_v31 }
  0x6c   : > { %780 = vmatprep.subr.bf16.mxu1 %v1036_v2 }
  0x6d   : > { %761 = vmatpush3.bf16.msra.mxu0 %v866_v14 }
  0x6e   : > { %762 = vmatprep.subr.bf16.mxu0 %v1036_v2 }
  0x6f   : > { %781 = vmatpush3.bf16.msra.mxu1 %v874_v32 }
  0x70   : > { %782 = vmatprep.subr.bf16.mxu1 %v1036_v2 }
  0x71   : > { %763 = vmatpush3.bf16.msra.mxu0 %v867_v15 }
  0x72   : > { %764 = vmatprep.subr.bf16.mxu0 %v1036_v2 }
  0x73   : > { %783 = vmatpush3.bf16.msra.mxu1 %v875_v33 }
  0x74   : > { %784 = vmatprep.subr.bf16.mxu1 %v1036_v2 }
  0x75   : > { %765 = vmatpush3.bf16.msra.mxu0 %v868_v16 }
  0x77   : > { %785 = vmatpush3.bf16.msra.mxu1 %v876_v34 }
  0xe1   : > { %v326_v6 = vpop.xlane.xlu0 %325 }
  0xe2   : > { %v327_v7 = vmul.f32 0.03125, %v326_v6 }
  0xe4   : > { %v328_v8 = vsub.f32 %v1211_v0, %v327_v7 }
  0xe6   : > { %v334_v9 = vsel %vm331_vm0, %v328_v8, 0.0 }
  0xe7   : > { %v335_v10 = vmul.f32 %v334_v9, %v334_v9 }
  0xe9   : > { %336 = vadd.xlane.f32.xlu0 %v335_v10 }
 0x172   : > { %v337_v17 = vpop.xlane.xlu0 %336 }
 0x173   : > { %v338_v18 = vmul.f32 0.03125, %v337_v17 }
 0x175   : > { %v339_v19 = vadd.f32 1e-05, %v338_v18 }
 0x177   : > { %877 = vrsqrt.f32 %v339_v19 }
 0x184   : > { %v878_v20 = vpop.eup %877 }
 0x185   : > { %v341_v22 = vmul.f32 %v878_v20, %v334_v9 }
 0x187   : > { %v349_v24 = vmul.f32 %v708_v21, %v341_v22 }
 0x189   : > { %v357_v25 = vadd.f32 %v709_v23, %v349_v24 }
 0x18b   : > { %v358_v26 = vpack.c.bf16 %v357_v25, %v357_v25 }
 0x18d   : > { %767 = vmatmul.mubr.bf16.vlgmr.msra.gmra.mxu0 %v358_v26 }
 0x24d   : > { %v464_v36 = vpop.f32.mrf.mxu0 }
 0x24e   : > { %v465_v37 = vadd.f32 %v710_v35, %v464_v36 }
 0x24f   : > { %v768_v38 = vpop.f32.mrf.mxu0 }
 0x250   : > { %v471_v39 = vmul.f32 0.044715, %v465_v37  ;;  %v470_v47 = vmul.f32 0.5, %v465_v37 }
 0x251   : > { %v467_v40 = vpop.f32.mrf.mxu0 }
 0x252   : > { %v472_v41 = vmul.f32 %v471_v39, %v465_v37 }
 0x253   : > { %v769_v42 = vpop.f32.mrf.mxu0 }
 0x254   : > { %v473_v43 = vmul.f32 %v472_v41, %v465_v37 }
 0x256   : > { %v474_v44 = vadd.f32 %v473_v43, %v465_v37 }
 0x258   : > { %v475_v45 = vmul.f32 0.7978846, %v474_v44 }
 0x25a   : > { %879 = vtanh.f32 %v475_v45 }
 0x267   : > { %v880_v46 = vpop.eup %879 }
 0x268   : > { %v477_v48 = vadd.f32 1.0, %v880_v46 }
 0x26a   : > { %v478_v49 = vmul.f32 %v477_v48, %v470_v47 }
 0x26c   : > { %v479_v50 = vpack.c.bf16 %v478_v49, %v478_v49 }
 0x26e   : > { %787 = vmatmul.mubr.bf16.vlgmr.msra.gmra.mxu1 %v479_v50 }
 0x32e   : > { %v585_v52 = vpop.f32.mrf.mxu1 }
 0x32f   : > { %v586_v53 = vadd.f32 %v719_v51, %v585_v52 }
 0x330   : > { %v788_v54 = vpop.f32.mrf.mxu1 }
 0x331   : > { %v591_v55 = vadd.f32 %v586_v53, %v1211_v0 }
 0x332   : > { %v588_v56 = vpop.f32.mrf.mxu1 }
 0x333   : > { %592 = vst [vmem:[%s322_s15] sm:$0xff] %v591_v55 }
 0x334   : > { %v789_v57 = vpop.f32.mrf.mxu1 }
 0x335   : > { %974 = shalt.err (!%p971_p9)
}
 0x336   : > { %s975_s20 = scalar_lea.hbm %s1252_s5, 128  ;;  %s979_s22 = scalar_lea.hbm %s1302_s7, 256 }
 0x337   : > { %p976_p13 = scmp.ne.s32.totalorder %s1252_s5, %s975_s20  ;;  %p980_p4 = scmp.lt.s32.totalorder %s1252_s5, %s1302_s7 }
 0x338   : > { %p981_p8 = scmp.lt.s32.totalorder %s979_s22, %s975_s20 }
 0x339   : > { %p977_p5 = pnand %p976_p13, %p1322_p0 }
 0x33a   : > { %p982_p3 = por %p981_p8, %p980_p4 }
 0x33b   : > { %p978_p10 = pneg %p977_p5 }
 0x33d   : > { %p983_p11 = pnand %p982_p3, %p978_p10 }
 0x33f   : > { %986 = shalt.err (!%p983_p11)
}
 0x340   : > { %800 = dma.vmem_to_hbm [thread:$0]  (%p1322_p0), %s1254_s19, 128, %s1252_s5, %s594_s28  }
 0x341 PF: > { %s619_s17 = sand.u32 1, %s1017_s24   ;;  %p1323_p1 = scmp.ne.s32.totalorder %s1310_s8, 0 }
 0x342   : > { %p1324_p2 = scmp.ge.s32.totalorder %s1029_s27, 2  ;;  %s620_s15 = scalar_lea.sflag [#allocation4], %s619_s17 }
 0x344   : > { %p814_p6 = pnand %p1324_p2, %p1323_p1 }
 0x346   : > { %p815_p12 = pneg %p814_p6 }
 0x348   : > { %1012 = dma.done.wait (%p815_p12), %s620_s15, 128  }
 0x349   : > { %1014 = vsyncadd (%p815_p12), %s620_s15, 4294967168  ;;  %p21_p7 = scmp.ge.s32.totalorder %s1151_s23, 4   ;;  %s1325_s24 = smov %s1021_s25 }
 0x34a   : > { %s1326_s25 = smov %s1025_s26  ;;  %s1327_s26 = smov %s1167_s12 }
 0x34b   : > { %s1328_s27 = smov %s1151_s23  ;;  %23 = sbr.rel (!%p21_p7) target bundleno = 9 (0x9), region = 101 }
 0x350   :  { %625 = vsyncpa [#allocation3], 1 }
 0x351   :  { %627 = vsyncpa [#allocation3 + $0x1], 1 }
 0x352   :  { %628 = vsyncpa [#allocation6], 1 }
 0x353   :  { %629 = vsyncpa [#allocation4], 1 }
 0x354   :  { %631 = vsyncpa [#allocation4 + $0x1], 1 }

</bundles_post_ra>
